<compile_context>
chip_gen: v7x
topology: tpu7x:2x2x1
jax: 0.10.0
libtpu: 0.0.40
codegen_flags: <defaults>
</compile_context>

<pallas_src>
import jax
import jax.numpy as jnp
from jax import lax
from jax.experimental import pallas as pl
from jax.experimental.pallas import tpu as pltpu


# ------------------------- Fused LSTM + MLP kernel ---------------------------

def fused_kernel(gx_ref, whh_ref, extras_ref, w1h_ref, w1e_ref, b1_ref,
                 w2t_ref, b2_ref, out_ref):
    """Single-invocation kernel.

    gx_ref:     (T, Bp, 4H)  precomputed x@W_ih + b, time-major
    whh_ref:    (H, 4H)      recurrent weights
    extras_ref: (Bp, 2E+F)   [client_emb | seg_emb | other_features]
    w1h_ref:    (H, 64)      rows of W1 that multiply the LSTM hidden state
    w1e_ref:    (2E+F, 64)   rows of W1 that multiply the extras
    b1_ref:     (1, 64)
    w2t_ref:    (1, 64)      W2 transposed (row vector)
    b2_ref:     (1, 1)
    out_ref:    (Bp, 1)
    """
    T = gx_ref.shape[0]
    Bp = gx_ref.shape[1]
    H = whh_ref.shape[0]

    whh = whh_ref[...]  # keep recurrent weights resident across the time loop

    def step(t, carry):
        h, c = carry
        # Only the serial part stays in the loop: h @ W_hh.
        gates = gx_ref[t] + jnp.dot(h, whh,
                                    preferred_element_type=jnp.float32)
        # PyTorch gate order: i, f, g, o
        i = jax.nn.sigmoid(gates[:, 0 * H:1 * H])
        f = jax.nn.sigmoid(gates[:, 1 * H:2 * H])
        g = jnp.tanh(gates[:, 2 * H:3 * H])
        o = jax.nn.sigmoid(gates[:, 3 * H:4 * H])
        c = f * c + i * g
        h = o * jnp.tanh(c)
        return (h, c)

    h0 = jnp.zeros((Bp, H), jnp.float32)
    c0 = jnp.zeros((Bp, H), jnp.float32)
    h, _ = lax.fori_loop(0, T, step, (h0, c0), unroll=True)

    # fc layer 1: concat eliminated by splitting W1 along the contraction dim.
    h1 = (jnp.dot(h, w1h_ref[...], preferred_element_type=jnp.float32)
          + jnp.dot(extras_ref[...], w1e_ref[...],
                    preferred_element_type=jnp.float32)
          + b1_ref[...])
    h1 = jnp.maximum(h1, 0.0)

    # fc layer 2 (64 -> 1): VPU multiply + lane reduction instead of a
    # 1-output-lane MXU matmul.
    out_ref[...] = (jnp.sum(h1 * w2t_ref[...], axis=-1, keepdims=True)
                    + b2_ref[...])


# ------------------------------ Model wrapper --------------------------------

def client_flow_predictor(params, market_seq, client_id, segment_id,
                          other_features):
    B, T, D = market_seq.shape
    H = params["w_hh"].shape[0]
    Bp = ((B + 7) // 8) * 8  # pad batch to full f32 sublane tiles

    # Hoisted input projection for all timesteps: one well-shaped matmul,
    # emitted time-major directly (transpose fused into the einsum).
    gx = jnp.einsum("btd,dg->tbg", market_seq, params["w_ih"],
                    preferred_element_type=jnp.float32) + params["b_lstm"]

    # Embedding gathers + non-recurrent features (glue, plain JAX).
    client_emb = jnp.take(params["client_emb"], client_id, axis=0)   # (B, E)
    seg_emb = jnp.take(params["segment_emb"], segment_id, axis=0)    # (B, E)
    extras = jnp.concatenate([client_emb, seg_emb, other_features],
                             axis=1)                                  # (B, 2E+F)

    if Bp != B:
        gx = jnp.pad(gx, ((0, 0), (0, Bp - B), (0, 0)))
        extras = jnp.pad(extras, ((0, Bp - B), (0, 0)))

    # Split W1 along its input dim to match [hidden | extras] (no in-kernel concat).
    w1h = params["w1"][:H]          # (H, 64)
    w1e = params["w1"][H:]          # (2E+F, 64)
    w2t = params["w2"].T            # (1, 64)

    vmem = pl.BlockSpec(memory_space=pltpu.MemorySpace.VMEM)
    out = pl.pallas_call(
        fused_kernel,
        out_shape=jax.ShapeDtypeStruct((Bp, 1), jnp.float32),
        in_specs=[vmem] * 8,
        out_specs=vmem,
    )(gx, params["w_hh"], extras, w1h, w1e, params["b1"], w2t, params["b2"])

    return out[:B]


# --------------------------- Pure-JAX reference -------------------------------

def reference(params, market_seq, client_id, segment_id, other_features):
    H = params["w_hh"].shape[0]

    def step(carry, x_t):
        h, c = carry
        gates = x_t @ params["w_ih"] + h @ params["w_hh"] + params["b_lstm"]
        i = jax.nn.sigmoid(gates[:, 0 * H:1 * H])
        f = jax.nn.sigmoid(gates[:, 1 * H:2 * H])
        g = jnp.tanh(gates[:, 2 * H:3 * H])
        o = jax.nn.sigmoid(gates[:, 3 * H:4 * H])
        c = f * c + i * g
        h = o * jnp.tanh(c)
        return (h, c), None

    B = market_seq.shape[0]
    h0 = jnp.zeros((B, H), jnp.float32)
    (hn, _), _ = jax.lax.scan(step, (h0, h0),
                              jnp.transpose(market_seq, (1, 0, 2)))
    client_emb = jnp.take(params["client_emb"], client_id, axis=0)
    seg_emb = jnp.take(params["segment_emb"], segment_id, axis=0)
    x = jnp.concatenate([hn, client_emb, seg_emb, other_features], axis=1)
    h1 = jnp.maximum(x @ params["w1"] + params["b1"], 0.0)
    return h1 @ params["w2"] + params["b2"]


# --------------------------------- Main ---------------------------------------

if __name__ == "__main__":
    B = 4                    # batch
    T = 8                    # market sequence length
    D = 8                    # market_input_dim
    E = 16                   # embedding_dim
    H = 64                   # hidden_size
    F_OTHER = 8              # other_feature_dim
    CLIENT_ID_SIZE = 500
    SEGMENT_SIZE = 10

    key = jax.random.PRNGKey(0)
    keys = jax.random.split(key, 12)

    params = {
        "client_emb": 0.1 * jax.random.normal(keys[0], (CLIENT_ID_SIZE, E), jnp.float32),
        "segment_emb": 0.1 * jax.random.normal(keys[1], (SEGMENT_SIZE, E), jnp.float32),
        # LSTM weights stored transposed (in_dim, 4H) relative to PyTorch;
        # bias = b_ih + b_hh combined.
        "w_ih": 0.1 * jax.random.normal(keys[2], (D, 4 * H), jnp.float32),
        "w_hh": 0.1 * jax.random.normal(keys[3], (H, 4 * H), jnp.float32),
        "b_lstm": 0.1 * jax.random.normal(keys[4], (1, 4 * H), jnp.float32),
        "w1": 0.1 * jax.random.normal(keys[5], (H + 2 * E + F_OTHER, 64), jnp.float32),
        "b1": 0.1 * jax.random.normal(keys[6], (1, 64), jnp.float32),
        "w2": 0.1 * jax.random.normal(keys[7], (64, 1), jnp.float32),
        "b2": 0.1 * jax.random.normal(keys[8], (1, 1), jnp.float32),
    }

    market_seq = jax.random.normal(keys[9], (B, T, D), jnp.float32)
    client_id = jax.random.randint(keys[10], (B,), 0, CLIENT_ID_SIZE)
    segment_id = jax.random.randint(keys[11], (B,), 0, SEGMENT_SIZE)
    other_features = jax.random.normal(jax.random.PRNGKey(42), (B, F_OTHER),
                                       jnp.float32)

    out = client_flow_predictor(params, market_seq, client_id, segment_id,
                                other_features)
    out = jax.block_until_ready(out)

    ref = jax.block_until_ready(
        reference(params, market_seq, client_id, segment_id, other_features))

    assert out.shape == (B, 1), out.shape
    assert jnp.allclose(out, ref, rtol=1e-4, atol=1e-4), (out, ref)
    print("KERNEL_OK")
</pallas_src>

<mosaic_0001>
module attributes {stable_mosaic.version = 11 : i64} {
  func.func @fused_kernel(%arg0: memref<8x8x256xf32, #tpu.memory_space<vmem>>, %arg1: memref<64x256xf32, #tpu.memory_space<vmem>>, %arg2: memref<8x40xf32, #tpu.memory_space<vmem>>, %arg3: memref<64x64xf32, #tpu.memory_space<vmem>>, %arg4: memref<40x64xf32, #tpu.memory_space<vmem>>, %arg5: memref<1x64xf32, #tpu.memory_space<vmem>>, %arg6: memref<1x64xf32, #tpu.memory_space<vmem>>, %arg7: memref<1x1xf32, #tpu.memory_space<vmem>>, %arg8: memref<8x1xf32, #tpu.memory_space<vmem>>) attributes {dimension_semantics = [], scalar_prefetch = 0 : i64, scratch_operands = 0 : i64, tpu.core_type = #tpu.core_type<tc>} {
    %c0 = arith.constant 0 : index
    %c0_0 = arith.constant 0 : index
    %0 = vector.load %arg1[%c0, %c0_0] : memref<64x256xf32, #tpu.memory_space<vmem>>, vector<64x256xf32>
    %cst = arith.constant 0.000000e+00 : f32
    %1 = vector.broadcast %cst : f32 to vector<8x64xf32>
    %cst_1 = arith.constant 0.000000e+00 : f32
    %2 = vector.broadcast %cst_1 : f32 to vector<8x64xf32>
    %c0_i32 = arith.constant 0 : i32
    %3 = arith.index_cast %c0_i32 : i32 to index
    %c0_2 = arith.constant 0 : index
    %c0_3 = arith.constant 0 : index
    %4 = vector.load %arg0[%3, %c0_2, %c0_3] : memref<8x8x256xf32, #tpu.memory_space<vmem>>, vector<1x8x256xf32>
    %5 = vector.shape_cast %4 : vector<1x8x256xf32> to vector<8x256xf32>
    %cst_4 = arith.constant dense<0.000000e+00> : vector<8x256xf32>
    %6 = tpu.matmul %1, %0, %cst_4 {dimension_numbers = #tpu.dot_dimension_numbers<[1], [0], [0], [1], [0, 0, 1, 1], [], []>} : vector<8x64xf32>, vector<64x256xf32>, vector<8x256xf32> -> vector<8x256xf32>
    %7 = arith.addf %5, %6 : vector<8x256xf32>
    %8 = vector.extract_strided_slice %7 {offsets = [0, 0], sizes = [8, 64], strides = [1, 1]} : vector<8x256xf32> to vector<8x64xf32>
    %9 = arith.negf %8 : vector<8x64xf32>
    %10 = math.exp %9 : vector<8x64xf32>
    %cst_5 = arith.constant 1.000000e+00 : f32
    %11 = vector.broadcast %cst_5 : f32 to vector<8x64xf32>
    %12 = arith.addf %11, %10 : vector<8x64xf32>
    %13 = arith.divf %11, %12 : vector<8x64xf32>
    %14 = vector.extract_strided_slice %7 {offsets = [0, 64], sizes = [8, 64], strides = [1, 1]} : vector<8x256xf32> to vector<8x64xf32>
    %15 = arith.negf %14 : vector<8x64xf32>
    %16 = math.exp %15 : vector<8x64xf32>
    %cst_6 = arith.constant 1.000000e+00 : f32
    %17 = vector.broadcast %cst_6 : f32 to vector<8x64xf32>
    %18 = arith.addf %17, %16 : vector<8x64xf32>
    %19 = arith.divf %17, %18 : vector<8x64xf32>
    %20 = vector.extract_strided_slice %7 {offsets = [0, 128], sizes = [8, 64], strides = [1, 1]} : vector<8x256xf32> to vector<8x64xf32>
    %21 = math.tanh %20 : vector<8x64xf32>
    %22 = vector.extract_strided_slice %7 {offsets = [0, 192], sizes = [8, 64], strides = [1, 1]} : vector<8x256xf32> to vector<8x64xf32>
    %23 = arith.negf %22 : vector<8x64xf32>
    %24 = math.exp %23 : vector<8x64xf32>
    %cst_7 = arith.constant 1.000000e+00 : f32
    %25 = vector.broadcast %cst_7 : f32 to vector<8x64xf32>
    %26 = arith.addf %25, %24 : vector<8x64xf32>
    %27 = arith.divf %25, %26 : vector<8x64xf32>
    %28 = arith.mulf %19, %2 : vector<8x64xf32>
    %29 = arith.mulf %13, %21 : vector<8x64xf32>
    %30 = arith.addf %28, %29 : vector<8x64xf32>
    %31 = math.tanh %30 : vector<8x64xf32>
    %32 = arith.mulf %27, %31 : vector<8x64xf32>
    %c1_i32 = arith.constant 1 : i32
    %33 = arith.index_cast %c1_i32 : i32 to index
    %c0_8 = arith.constant 0 : index
    %c0_9 = arith.constant 0 : index
    %34 = vector.load %arg0[%33, %c0_8, %c0_9] : memref<8x8x256xf32, #tpu.memory_space<vmem>>, vector<1x8x256xf32>
    %35 = vector.shape_cast %34 : vector<1x8x256xf32> to vector<8x256xf32>
    %cst_10 = arith.constant dense<0.000000e+00> : vector<8x256xf32>
    %36 = tpu.matmul %32, %0, %cst_10 {dimension_numbers = #tpu.dot_dimension_numbers<[1], [0], [0], [1], [0, 0, 1, 1], [], []>} : vector<8x64xf32>, vector<64x256xf32>, vector<8x256xf32> -> vector<8x256xf32>
    %37 = arith.addf %35, %36 : vector<8x256xf32>
    %38 = vector.extract_strided_slice %37 {offsets = [0, 0], sizes = [8, 64], strides = [1, 1]} : vector<8x256xf32> to vector<8x64xf32>
    %39 = arith.negf %38 : vector<8x64xf32>
    %40 = math.exp %39 : vector<8x64xf32>
    %cst_11 = arith.constant 1.000000e+00 : f32
    %41 = vector.broadcast %cst_11 : f32 to vector<8x64xf32>
    %42 = arith.addf %41, %40 : vector<8x64xf32>
    %43 = arith.divf %41, %42 : vector<8x64xf32>
    %44 = vector.extract_strided_slice %37 {offsets = [0, 64], sizes = [8, 64], strides = [1, 1]} : vector<8x256xf32> to vector<8x64xf32>
    %45 = arith.negf %44 : vector<8x64xf32>
    %46 = math.exp %45 : vector<8x64xf32>
    %cst_12 = arith.constant 1.000000e+00 : f32
    %47 = vector.broadcast %cst_12 : f32 to vector<8x64xf32>
    %48 = arith.addf %47, %46 : vector<8x64xf32>
    %49 = arith.divf %47, %48 : vector<8x64xf32>
    %50 = vector.extract_strided_slice %37 {offsets = [0, 128], sizes = [8, 64], strides = [1, 1]} : vector<8x256xf32> to vector<8x64xf32>
    %51 = math.tanh %50 : vector<8x64xf32>
    %52 = vector.extract_strided_slice %37 {offsets = [0, 192], sizes = [8, 64], strides = [1, 1]} : vector<8x256xf32> to vector<8x64xf32>
    %53 = arith.negf %52 : vector<8x64xf32>
    %54 = math.exp %53 : vector<8x64xf32>
    %cst_13 = arith.constant 1.000000e+00 : f32
    %55 = vector.broadcast %cst_13 : f32 to vector<8x64xf32>
    %56 = arith.addf %55, %54 : vector<8x64xf32>
    %57 = arith.divf %55, %56 : vector<8x64xf32>
    %58 = arith.mulf %49, %30 : vector<8x64xf32>
    %59 = arith.mulf %43, %51 : vector<8x64xf32>
    %60 = arith.addf %58, %59 : vector<8x64xf32>
    %61 = math.tanh %60 : vector<8x64xf32>
    %62 = arith.mulf %57, %61 : vector<8x64xf32>
    %c2_i32 = arith.constant 2 : i32
    %63 = arith.index_cast %c2_i32 : i32 to index
    %c0_14 = arith.constant 0 : index
    %c0_15 = arith.constant 0 : index
    %64 = vector.load %arg0[%63, %c0_14, %c0_15] : memref<8x8x256xf32, #tpu.memory_space<vmem>>, vector<1x8x256xf32>
    %65 = vector.shape_cast %64 : vector<1x8x256xf32> to vector<8x256xf32>
    %cst_16 = arith.constant dense<0.000000e+00> : vector<8x256xf32>
    %66 = tpu.matmul %62, %0, %cst_16 {dimension_numbers = #tpu.dot_dimension_numbers<[1], [0], [0], [1], [0, 0, 1, 1], [], []>} : vector<8x64xf32>, vector<64x256xf32>, vector<8x256xf32> -> vector<8x256xf32>
    %67 = arith.addf %65, %66 : vector<8x256xf32>
    %68 = vector.extract_strided_slice %67 {offsets = [0, 0], sizes = [8, 64], strides = [1, 1]} : vector<8x256xf32> to vector<8x64xf32>
    %69 = arith.negf %68 : vector<8x64xf32>
    %70 = math.exp %69 : vector<8x64xf32>
    %cst_17 = arith.constant 1.000000e+00 : f32
    %71 = vector.broadcast %cst_17 : f32 to vector<8x64xf32>
    %72 = arith.addf %71, %70 : vector<8x64xf32>
    %73 = arith.divf %71, %72 : vector<8x64xf32>
    %74 = vector.extract_strided_slice %67 {offsets = [0, 64], sizes = [8, 64], strides = [1, 1]} : vector<8x256xf32> to vector<8x64xf32>
    %75 = arith.negf %74 : vector<8x64xf32>
    %76 = math.exp %75 : vector<8x64xf32>
    %cst_18 = arith.constant 1.000000e+00 : f32
    %77 = vector.broadcast %cst_18 : f32 to vector<8x64xf32>
    %78 = arith.addf %77, %76 : vector<8x64xf32>
    %79 = arith.divf %77, %78 : vector<8x64xf32>
    %80 = vector.extract_strided_slice %67 {offsets = [0, 128], sizes = [8, 64], strides = [1, 1]} : vector<8x256xf32> to vector<8x64xf32>
    %81 = math.tanh %80 : vector<8x64xf32>
    %82 = vector.extract_strided_slice %67 {offsets = [0, 192], sizes = [8, 64], strides = [1, 1]} : vector<8x256xf32> to vector<8x64xf32>
    %83 = arith.negf %82 : vector<8x64xf32>
    %84 = math.exp %83 : vector<8x64xf32>
    %cst_19 = arith.constant 1.000000e+00 : f32
    %85 = vector.broadcast %cst_19 : f32 to vector<8x64xf32>
    %86 = arith.addf %85, %84 : vector<8x64xf32>
    %87 = arith.divf %85, %86 : vector<8x64xf32>
    %88 = arith.mulf %79, %60 : vector<8x64xf32>
    %89 = arith.mulf %73, %81 : vector<8x64xf32>
    %90 = arith.addf %88, %89 : vector<8x64xf32>
    %91 = math.tanh %90 : vector<8x64xf32>
    %92 = arith.mulf %87, %91 : vector<8x64xf32>
    %c3_i32 = arith.constant 3 : i32
    %93 = arith.index_cast %c3_i32 : i32 to index
    %c0_20 = arith.constant 0 : index
    %c0_21 = arith.constant 0 : index
    %94 = vector.load %arg0[%93, %c0_20, %c0_21] : memref<8x8x256xf32, #tpu.memory_space<vmem>>, vector<1x8x256xf32>
    %95 = vector.shape_cast %94 : vector<1x8x256xf32> to vector<8x256xf32>
    %cst_22 = arith.constant dense<0.000000e+00> : vector<8x256xf32>
    %96 = tpu.matmul %92, %0, %cst_22 {dimension_numbers = #tpu.dot_dimension_numbers<[1], [0], [0], [1], [0, 0, 1, 1], [], []>} : vector<8x64xf32>, vector<64x256xf32>, vector<8x256xf32> -> vector<8x256xf32>
    %97 = arith.addf %95, %96 : vector<8x256xf32>
    %98 = vector.extract_strided_slice %97 {offsets = [0, 0], sizes = [8, 64], strides = [1, 1]} : vector<8x256xf32> to vector<8x64xf32>
    %99 = arith.negf %98 : vector<8x64xf32>
    %100 = math.exp %99 : vector<8x64xf32>
    %cst_23 = arith.constant 1.000000e+00 : f32
    %101 = vector.broadcast %cst_23 : f32 to vector<8x64xf32>
    %102 = arith.addf %101, %100 : vector<8x64xf32>
    %103 = arith.divf %101, %102 : vector<8x64xf32>
    %104 = vector.extract_strided_slice %97 {offsets = [0, 64], sizes = [8, 64], strides = [1, 1]} : vector<8x256xf32> to vector<8x64xf32>
    %105 = arith.negf %104 : vector<8x64xf32>
    %106 = math.exp %105 : vector<8x64xf32>
    %cst_24 = arith.constant 1.000000e+00 : f32
    %107 = vector.broadcast %cst_24 : f32 to vector<8x64xf32>
    %108 = arith.addf %107, %106 : vector<8x64xf32>
    %109 = arith.divf %107, %108 : vector<8x64xf32>
    %110 = vector.extract_strided_slice %97 {offsets = [0, 128], sizes = [8, 64], strides = [1, 1]} : vector<8x256xf32> to vector<8x64xf32>
    %111 = math.tanh %110 : vector<8x64xf32>
    %112 = vector.extract_strided_slice %97 {offsets = [0, 192], sizes = [8, 64], strides = [1, 1]} : vector<8x256xf32> to vector<8x64xf32>
    %113 = arith.negf %112 : vector<8x64xf32>
    %114 = math.exp %113 : vector<8x64xf32>
    %cst_25 = arith.constant 1.000000e+00 : f32
    %115 = vector.broadcast %cst_25 : f32 to vector<8x64xf32>
    %116 = arith.addf %115, %114 : vector<8x64xf32>
    %117 = arith.divf %115, %116 : vector<8x64xf32>
    %118 = arith.mulf %109, %90 : vector<8x64xf32>
    %119 = arith.mulf %103, %111 : vector<8x64xf32>
    %120 = arith.addf %118, %119 : vector<8x64xf32>
    %121 = math.tanh %120 : vector<8x64xf32>
    %122 = arith.mulf %117, %121 : vector<8x64xf32>
    %c4_i32 = arith.constant 4 : i32
    %123 = arith.index_cast %c4_i32 : i32 to index
    %c0_26 = arith.constant 0 : index
    %c0_27 = arith.constant 0 : index
    %124 = vector.load %arg0[%123, %c0_26, %c0_27] : memref<8x8x256xf32, #tpu.memory_space<vmem>>, vector<1x8x256xf32>
    %125 = vector.shape_cast %124 : vector<1x8x256xf32> to vector<8x256xf32>
    %cst_28 = arith.constant dense<0.000000e+00> : vector<8x256xf32>
    %126 = tpu.matmul %122, %0, %cst_28 {dimension_numbers = #tpu.dot_dimension_numbers<[1], [0], [0], [1], [0, 0, 1, 1], [], []>} : vector<8x64xf32>, vector<64x256xf32>, vector<8x256xf32> -> vector<8x256xf32>
    %127 = arith.addf %125, %126 : vector<8x256xf32>
    %128 = vector.extract_strided_slice %127 {offsets = [0, 0], sizes = [8, 64], strides = [1, 1]} : vector<8x256xf32> to vector<8x64xf32>
    %129 = arith.negf %128 : vector<8x64xf32>
    %130 = math.exp %129 : vector<8x64xf32>
    %cst_29 = arith.constant 1.000000e+00 : f32
    %131 = vector.broadcast %cst_29 : f32 to vector<8x64xf32>
    %132 = arith.addf %131, %130 : vector<8x64xf32>
    %133 = arith.divf %131, %132 : vector<8x64xf32>
    %134 = vector.extract_strided_slice %127 {offsets = [0, 64], sizes = [8, 64], strides = [1, 1]} : vector<8x256xf32> to vector<8x64xf32>
    %135 = arith.negf %134 : vector<8x64xf32>
    %136 = math.exp %135 : vector<8x64xf32>
    %cst_30 = arith.constant 1.000000e+00 : f32
    %137 = vector.broadcast %cst_30 : f32 to vector<8x64xf32>
    %138 = arith.addf %137, %136 : vector<8x64xf32>
    %139 = arith.divf %137, %138 : vector<8x64xf32>
    %140 = vector.extract_strided_slice %127 {offsets = [0, 128], sizes = [8, 64], strides = [1, 1]} : vector<8x256xf32> to vector<8x64xf32>
    %141 = math.tanh %140 : vector<8x64xf32>
    %142 = vector.extract_strided_slice %127 {offsets = [0, 192], sizes = [8, 64], strides = [1, 1]} : vector<8x256xf32> to vector<8x64xf32>
    %143 = arith.negf %142 : vector<8x64xf32>
    %144 = math.exp %143 : vector<8x64xf32>
    %cst_31 = arith.constant 1.000000e+00 : f32
    %145 = vector.broadcast %cst_31 : f32 to vector<8x64xf32>
    %146 = arith.addf %145, %144 : vector<8x64xf32>
    %147 = arith.divf %145, %146 : vector<8x64xf32>
    %148 = arith.mulf %139, %120 : vector<8x64xf32>
    %149 = arith.mulf %133, %141 : vector<8x64xf32>
    %150 = arith.addf %148, %149 : vector<8x64xf32>
    %151 = math.tanh %150 : vector<8x64xf32>
    %152 = arith.mulf %147, %151 : vector<8x64xf32>
    %c5_i32 = arith.constant 5 : i32
    %153 = arith.index_cast %c5_i32 : i32 to index
    %c0_32 = arith.constant 0 : index
    %c0_33 = arith.constant 0 : index
    %154 = vector.load %arg0[%153, %c0_32, %c0_33] : memref<8x8x256xf32, #tpu.memory_space<vmem>>, vector<1x8x256xf32>
    %155 = vector.shape_cast %154 : vector<1x8x256xf32> to vector<8x256xf32>
    %cst_34 = arith.constant dense<0.000000e+00> : vector<8x256xf32>
    %156 = tpu.matmul %152, %0, %cst_34 {dimension_numbers = #tpu.dot_dimension_numbers<[1], [0], [0], [1], [0, 0, 1, 1], [], []>} : vector<8x64xf32>, vector<64x256xf32>, vector<8x256xf32> -> vector<8x256xf32>
    %157 = arith.addf %155, %156 : vector<8x256xf32>
    %158 = vector.extract_strided_slice %157 {offsets = [0, 0], sizes = [8, 64], strides = [1, 1]} : vector<8x256xf32> to vector<8x64xf32>
    %159 = arith.negf %158 : vector<8x64xf32>
    %160 = math.exp %159 : vector<8x64xf32>
    %cst_35 = arith.constant 1.000000e+00 : f32
    %161 = vector.broadcast %cst_35 : f32 to vector<8x64xf32>
    %162 = arith.addf %161, %160 : vector<8x64xf32>
    %163 = arith.divf %161, %162 : vector<8x64xf32>
    %164 = vector.extract_strided_slice %157 {offsets = [0, 64], sizes = [8, 64], strides = [1, 1]} : vector<8x256xf32> to vector<8x64xf32>
    %165 = arith.negf %164 : vector<8x64xf32>
    %166 = math.exp %165 : vector<8x64xf32>
    %cst_36 = arith.constant 1.000000e+00 : f32
    %167 = vector.broadcast %cst_36 : f32 to vector<8x64xf32>
    %168 = arith.addf %167, %166 : vector<8x64xf32>
    %169 = arith.divf %167, %168 : vector<8x64xf32>
    %170 = vector.extract_strided_slice %157 {offsets = [0, 128], sizes = [8, 64], strides = [1, 1]} : vector<8x256xf32> to vector<8x64xf32>
    %171 = math.tanh %170 : vector<8x64xf32>
    %172 = vector.extract_strided_slice %157 {offsets = [0, 192], sizes = [8, 64], strides = [1, 1]} : vector<8x256xf32> to vector<8x64xf32>
    %173 = arith.negf %172 : vector<8x64xf32>
    %174 = math.exp %173 : vector<8x64xf32>
    %cst_37 = arith.constant 1.000000e+00 : f32
    %175 = vector.broadcast %cst_37 : f32 to vector<8x64xf32>
    %176 = arith.addf %175, %174 : vector<8x64xf32>
    %177 = arith.divf %175, %176 : vector<8x64xf32>
    %178 = arith.mulf %169, %150 : vector<8x64xf32>
    %179 = arith.mulf %163, %171 : vector<8x64xf32>
    %180 = arith.addf %178, %179 : vector<8x64xf32>
    %181 = math.tanh %180 : vector<8x64xf32>
    %182 = arith.mulf %177, %181 : vector<8x64xf32>
    %c6_i32 = arith.constant 6 : i32
    %183 = arith.index_cast %c6_i32 : i32 to index
    %c0_38 = arith.constant 0 : index
    %c0_39 = arith.constant 0 : index
    %184 = vector.load %arg0[%183, %c0_38, %c0_39] : memref<8x8x256xf32, #tpu.memory_space<vmem>>, vector<1x8x256xf32>
    %185 = vector.shape_cast %184 : vector<1x8x256xf32> to vector<8x256xf32>
    %cst_40 = arith.constant dense<0.000000e+00> : vector<8x256xf32>
    %186 = tpu.matmul %182, %0, %cst_40 {dimension_numbers = #tpu.dot_dimension_numbers<[1], [0], [0], [1], [0, 0, 1, 1], [], []>} : vector<8x64xf32>, vector<64x256xf32>, vector<8x256xf32> -> vector<8x256xf32>
    %187 = arith.addf %185, %186 : vector<8x256xf32>
    %188 = vector.extract_strided_slice %187 {offsets = [0, 0], sizes = [8, 64], strides = [1, 1]} : vector<8x256xf32> to vector<8x64xf32>
    %189 = arith.negf %188 : vector<8x64xf32>
    %190 = math.exp %189 : vector<8x64xf32>
    %cst_41 = arith.constant 1.000000e+00 : f32
    %191 = vector.broadcast %cst_41 : f32 to vector<8x64xf32>
    %192 = arith.addf %191, %190 : vector<8x64xf32>
    %193 = arith.divf %191, %192 : vector<8x64xf32>
    %194 = vector.extract_strided_slice %187 {offsets = [0, 64], sizes = [8, 64], strides = [1, 1]} : vector<8x256xf32> to vector<8x64xf32>
    %195 = arith.negf %194 : vector<8x64xf32>
    %196 = math.exp %195 : vector<8x64xf32>
    %cst_42 = arith.constant 1.000000e+00 : f32
    %197 = vector.broadcast %cst_42 : f32 to vector<8x64xf32>
    %198 = arith.addf %197, %196 : vector<8x64xf32>
    %199 = arith.divf %197, %198 : vector<8x64xf32>
    %200 = vector.extract_strided_slice %187 {offsets = [0, 128], sizes = [8, 64], strides = [1, 1]} : vector<8x256xf32> to vector<8x64xf32>
    %201 = math.tanh %200 : vector<8x64xf32>
    %202 = vector.extract_strided_slice %187 {offsets = [0, 192], sizes = [8, 64], strides = [1, 1]} : vector<8x256xf32> to vector<8x64xf32>
    %203 = arith.negf %202 : vector<8x64xf32>
    %204 = math.exp %203 : vector<8x64xf32>
    %cst_43 = arith.constant 1.000000e+00 : f32
    %205 = vector.broadcast %cst_43 : f32 to vector<8x64xf32>
    %206 = arith.addf %205, %204 : vector<8x64xf32>
    %207 = arith.divf %205, %206 : vector<8x64xf32>
    %208 = arith.mulf %199, %180 : vector<8x64xf32>
    %209 = arith.mulf %193, %201 : vector<8x64xf32>
    %210 = arith.addf %208, %209 : vector<8x64xf32>
    %211 = math.tanh %210 : vector<8x64xf32>
    %212 = arith.mulf %207, %211 : vector<8x64xf32>
    %c7_i32 = arith.constant 7 : i32
    %213 = arith.index_cast %c7_i32 : i32 to index
    %c0_44 = arith.constant 0 : index
    %c0_45 = arith.constant 0 : index
    %214 = vector.load %arg0[%213, %c0_44, %c0_45] : memref<8x8x256xf32, #tpu.memory_space<vmem>>, vector<1x8x256xf32>
    %215 = vector.shape_cast %214 : vector<1x8x256xf32> to vector<8x256xf32>
    %cst_46 = arith.constant dense<0.000000e+00> : vector<8x256xf32>
    %216 = tpu.matmul %212, %0, %cst_46 {dimension_numbers = #tpu.dot_dimension_numbers<[1], [0], [0], [1], [0, 0, 1, 1], [], []>} : vector<8x64xf32>, vector<64x256xf32>, vector<8x256xf32> -> vector<8x256xf32>
    %217 = arith.addf %215, %216 : vector<8x256xf32>
    %218 = vector.extract_strided_slice %217 {offsets = [0, 0], sizes = [8, 64], strides = [1, 1]} : vector<8x256xf32> to vector<8x64xf32>
    %219 = arith.negf %218 : vector<8x64xf32>
    %220 = math.exp %219 : vector<8x64xf32>
    %cst_47 = arith.constant 1.000000e+00 : f32
    %221 = vector.broadcast %cst_47 : f32 to vector<8x64xf32>
    %222 = arith.addf %221, %220 : vector<8x64xf32>
    %223 = arith.divf %221, %222 : vector<8x64xf32>
    %224 = vector.extract_strided_slice %217 {offsets = [0, 64], sizes = [8, 64], strides = [1, 1]} : vector<8x256xf32> to vector<8x64xf32>
    %225 = arith.negf %224 : vector<8x64xf32>
    %226 = math.exp %225 : vector<8x64xf32>
    %cst_48 = arith.constant 1.000000e+00 : f32
    %227 = vector.broadcast %cst_48 : f32 to vector<8x64xf32>
    %228 = arith.addf %227, %226 : vector<8x64xf32>
    %229 = arith.divf %227, %228 : vector<8x64xf32>
    %230 = vector.extract_strided_slice %217 {offsets = [0, 128], sizes = [8, 64], strides = [1, 1]} : vector<8x256xf32> to vector<8x64xf32>
    %231 = math.tanh %230 : vector<8x64xf32>
    %232 = vector.extract_strided_slice %217 {offsets = [0, 192], sizes = [8, 64], strides = [1, 1]} : vector<8x256xf32> to vector<8x64xf32>
    %233 = arith.negf %232 : vector<8x64xf32>
    %234 = math.exp %233 : vector<8x64xf32>
    %cst_49 = arith.constant 1.000000e+00 : f32
    %235 = vector.broadcast %cst_49 : f32 to vector<8x64xf32>
    %236 = arith.addf %235, %234 : vector<8x64xf32>
    %237 = arith.divf %235, %236 : vector<8x64xf32>
    %238 = arith.mulf %229, %210 : vector<8x64xf32>
    %239 = arith.mulf %223, %231 : vector<8x64xf32>
    %240 = arith.addf %238, %239 : vector<8x64xf32>
    %241 = math.tanh %240 : vector<8x64xf32>
    %242 = arith.mulf %237, %241 : vector<8x64xf32>
    %c8_i32 = arith.constant 8 : i32
    %c0_50 = arith.constant 0 : index
    %c0_51 = arith.constant 0 : index
    %243 = vector.load %arg3[%c0_50, %c0_51] : memref<64x64xf32, #tpu.memory_space<vmem>>, vector<64x64xf32>
    %cst_52 = arith.constant dense<0.000000e+00> : vector<8x64xf32>
    %244 = tpu.matmul %242, %243, %cst_52 {dimension_numbers = #tpu.dot_dimension_numbers<[1], [0], [0], [1], [0, 0, 1, 1], [], []>} : vector<8x64xf32>, vector<64x64xf32>, vector<8x64xf32> -> vector<8x64xf32>
    %c0_53 = arith.constant 0 : index
    %c0_54 = arith.constant 0 : index
    %245 = vector.load %arg2[%c0_53, %c0_54] : memref<8x40xf32, #tpu.memory_space<vmem>>, vector<8x40xf32>
    %c0_55 = arith.constant 0 : index
    %c0_56 = arith.constant 0 : index
    %246 = vector.load %arg4[%c0_55, %c0_56] : memref<40x64xf32, #tpu.memory_space<vmem>>, vector<40x64xf32>
    %cst_57 = arith.constant dense<0.000000e+00> : vector<8x64xf32>
    %247 = tpu.matmul %245, %246, %cst_57 {dimension_numbers = #tpu.dot_dimension_numbers<[1], [0], [0], [1], [0, 0, 1, 1], [], []>} : vector<8x40xf32>, vector<40x64xf32>, vector<8x64xf32> -> vector<8x64xf32>
    %248 = arith.addf %244, %247 : vector<8x64xf32>
    %c0_58 = arith.constant 0 : index
    %c0_59 = arith.constant 0 : index
    %249 = vector.load %arg5[%c0_58, %c0_59] : memref<1x64xf32, #tpu.memory_space<vmem>>, vector<1x64xf32>
    %250 = vector.broadcast %249 : vector<1x64xf32> to vector<8x64xf32>
    %251 = arith.addf %248, %250 : vector<8x64xf32>
    %cst_60 = arith.constant 0.000000e+00 : f32
    %252 = vector.broadcast %cst_60 : f32 to vector<8x64xf32>
    %253 = arith.maximumf %251, %252 : vector<8x64xf32>
    %c0_61 = arith.constant 0 : index
    %c0_62 = arith.constant 0 : index
    %254 = vector.load %arg6[%c0_61, %c0_62] : memref<1x64xf32, #tpu.memory_space<vmem>>, vector<1x64xf32>
    %255 = vector.broadcast %254 : vector<1x64xf32> to vector<8x64xf32>
    %256 = arith.mulf %253, %255 : vector<8x64xf32>
    %cst_63 = arith.constant dense<0.000000e+00> : vector<8xf32>
    %257 = vector.multi_reduction <add>, %256, %cst_63 [1] : vector<8x64xf32> to vector<8xf32>
    %258 = vector.shape_cast %257 : vector<8xf32> to vector<8x1xf32>
    %c0_64 = arith.constant 0 : index
    %c0_65 = arith.constant 0 : index
    %259 = vector.load %arg7[%c0_64, %c0_65] : memref<1x1xf32, #tpu.memory_space<vmem>>, vector<1x1xf32>
    %260 = vector.broadcast %259 : vector<1x1xf32> to vector<8x1xf32>
    %261 = arith.addf %258, %260 : vector<8x1xf32>
    %c0_66 = arith.constant 0 : index
    %c0_67 = arith.constant 0 : index
    %262 = vector.load %arg8[%c0_66, %c0_67] : memref<8x1xf32, #tpu.memory_space<vmem>>, vector<8x1xf32>
    tpu.vector_store %arg8[%c0_66, %c0_67], %261 {strides = array<i32>} : memref<8x1xf32, #tpu.memory_space<vmem>>, vector<8x1xf32>,
    return
  }
}

</mosaic_0001>

<bundles_post_ra>
// kernel: tpu_custom_call.1
= control target key start
LH: loop header
LB: loop body
LE: loop exit
PB: predicated region body
PF: predicated region fallthrough
CT: control target
= control target key end

     0   :  { %s1795_s0 = inlined_call_operand.hbm [shape: f32[8,8,256], index: 0, kind: input, shape index: {}]   ;;  %s1796_s1 = inlined_call_operand.hbm [shape: f32[64,256], index: 1, kind: input, shape index: {}]   ;;  %s1797_s2 = inlined_call_operand.vmem [shape: f32[8,40], index: 2, kind: input, shape index: {}]   ;;  %s1798_s3 = inlined_call_operand.hbm [shape: f32[64,64], index: 3, kind: input, shape index: {}]   ;;  %s1799_s4 = inlined_call_operand.hbm [shape: f32[40,64], index: 4, kind: input, shape index: {}]   ;;  %s1800_s5 = inlined_call_operand.vmem [shape: f32[1,64], index: 5, kind: input, shape index: {}]   ;;  %s1801_s6 = inlined_call_operand.vmem [shape: f32[1,64], index: 6, kind: input, shape index: {}]   ;;  %s1802_s7 = inlined_call_operand.<no memory space> [shape: f32[1,1], index: 7, kind: input, shape index: {}]   ;;  %s1803_s8 = inlined_call_operand.vmem [shape: f32[8,1], index: 8, kind: output, shape index: {}]  }
   0x1   :  { %v13_v0 = vstv %s1802_s7 }
   0x2   :  { %14 = vst [vmem:[#allocation2] sm:$0x1] %v13_v0 }
   0x3   :  { %15 = vsyncpa [#allocation4], 0 }
   0x4   :  { %16 = vsyncpa [#allocation6], 0 }
   0x5   :  { %17 = vsyncpa [#allocation9], 0  ;;  %s1547_s29 = smov [#allocation5]   ;;  %s1548_s9 = smov [#allocation3]  }
   0x6   :  { %s35_s30 = sshll.u32 %s1547_s29, 4  ;;  %s23_s10 = sshll.u32 %s1548_s9, 4  ;;  %s36_s30 = int_to_ptr.vmem [resolvable:$true] %s35_s30  ;;  %s1607_s10 = int_to_ptr.vmem [resolvable:$true] %s23_s10 }
   0x7   :  { %s1453_s13 = scalar_lea.hbm %s1796_s1, 2048 }
   0x8   :  { %p1454_p0 = scmp.ne.s32.totalorder %s1796_s1, %s1453_s13  ;;  %p1457_p1 = scmp.lt.u32.totalorder %s1453_s13, %s1796_s1 }
   0xa   :  { %p1459_p2 = pnand %p1457_p1, %p1454_p0 }
   0xc   :  { %1462 = shalt.err (!%p1459_p2)
}
   0xd   :  { %s1463_s17 = scalar_lea.vmem %s36_s30, 2048  ;;  %p1468_p4 = scmp.lt.s32.totalorder %s36_s30, %s36_s30 }
   0xe   :  { %p1464_p3 = scmp.ne.s32.totalorder %s36_s30, %s1463_s17  ;;  %p1469_p5 = scmp.lt.s32.totalorder %s1463_s17, %s1463_s17 }
  0x10   :  { %p1470_p6 = por %p1469_p5, %p1468_p4 }
  0x12   :  { %p1471_p7 = pnand %p1470_p6, %p1464_p3 }
  0x14   :  { %1474 = shalt.err (!%p1471_p7)
}
  0x15   :  { %s1549_s18 = smov 256   ;;  %s1550_s19 = smov 16  }
  0x16   :  { %41 = dma.hbm_to_vmem [thread:$0]  %s1796_s1, 2048, %s36_s30, [#allocation6], %s1549_s18, %s1549_s18, %s1550_s19  }
  0x17   :  { %s1475_s24 = scalar_lea.hbm %s1795_s0, 2048 }
  0x18   :  { %p1476_p8 = scmp.ne.s32.totalorder %s1795_s0, %s1475_s24  ;;  %p1479_p9 = scmp.lt.u32.totalorder %s1475_s24, %s1795_s0 }
  0x1a   :  { %p1481_p10 = pnand %p1479_p9, %p1476_p8 }
  0x1c   :  { %1484 = shalt.err (!%p1481_p10)
}
  0x1d   :  { %s1485_s29 = scalar_lea.vmem %s1607_s10, 2048  ;;  %p1490_p12 = scmp.lt.s32.totalorder %s1607_s10, %s1607_s10 }
  0x1e   :  { %p1486_p11 = scmp.ne.s32.totalorder %s1607_s10, %s1485_s29  ;;  %p1491_p13 = scmp.lt.s32.totalorder %s1485_s29, %s1485_s29 }
  0x20   :  { %p1492_p0 = por %p1491_p13, %p1490_p12 }
  0x22   :  { %p1493_p1 = pnand %p1492_p0, %p1486_p11 }
  0x24   :  { %1496 = shalt.err (!%p1493_p1)
}
  0x25   :  { %29 = dma.hbm_to_vmem [thread:$0]  %s1795_s0, 2048, %s1607_s10, [#allocation4], %s1549_s18, %s1549_s18, %s1550_s19  }
  0x26   :  { %s1551_s9 = smov [#allocation7]   ;;  %s1497_s14 = scalar_lea.hbm %s1798_s3, 1024 }
  0x27   :  { %s49_s11 = sshll.u32 %s1551_s9, 4  ;;  %p1498_p2 = scmp.ne.s32.totalorder %s1798_s3, %s1497_s14  ;;  %s50_s11 = int_to_ptr.vmem [resolvable:$true] %s49_s11 }
  0x28   :  { %p1501_p3 = scmp.lt.u32.totalorder %s1497_s14, %s1798_s3 }
  0x2a   :  { %p1503_p4 = pnand %p1501_p3, %p1498_p2 }
  0x2c   :  { %1506 = shalt.err (!%p1503_p4)
}
  0x2d   :  { %s1507_s20 = scalar_lea.vmem %s50_s11, 1024  ;;  %p1512_p6 = scmp.lt.s32.totalorder %s50_s11, %s50_s11 }
  0x2e   :  { %p1508_p5 = scmp.ne.s32.totalorder %s50_s11, %s1507_s20  ;;  %p1513_p7 = scmp.lt.s32.totalorder %s1507_s20, %s1507_s20 }
  0x30   :  { %p1514_p8 = por %p1513_p7, %p1512_p6 }
  0x32   :  { %p1515_p9 = pnand %p1514_p8, %p1508_p5 }
  0x34   :  { %1518 = shalt.err (!%p1515_p9)
}
  0x35   :  { %s1552_s0 = smov 128   ;;  %s1553_s10 = smov 8  }
  0x36   :  { %55 = dma.hbm_to_vmem [thread:$0]  %s1798_s3, 1024, %s50_s11, [#allocation6], %s1552_s0, %s1552_s0, %s1553_s10  }
  0x37   :  { %s1554_s21 = smov [#allocation8]   ;;  %s1519_s25 = scalar_lea.hbm %s1799_s4, 640 }
  0x38   :  { %s61_s22 = sshll.u32 %s1554_s21, 4  ;;  %p1520_p10 = scmp.ne.s32.totalorder %s1799_s4, %s1519_s25  ;;  %s62_s22 = int_to_ptr.vmem [resolvable:$true] %s61_s22 }
  0x39   :  { %p1523_p11 = scmp.lt.u32.totalorder %s1519_s25, %s1799_s4 }
  0x3b   :  { %p1525_p12 = pnand %p1523_p11, %p1520_p10 }
  0x3d   :  { %1528 = shalt.err (!%p1525_p12)
}
  0x3e   :  { %s1529_s1 = scalar_lea.vmem %s62_s22, 640  ;;  %p1534_p0 = scmp.lt.s32.totalorder %s62_s22, %s62_s22 }
  0x3f   :  { %p1530_p13 = scmp.ne.s32.totalorder %s62_s22, %s1529_s1  ;;  %p1535_p1 = scmp.lt.s32.totalorder %s1529_s1, %s1529_s1 }
  0x41   :  { %p1536_p2 = por %p1535_p1, %p1534_p0 }
  0x43   :  { %p1537_p3 = pnand %p1536_p2, %p1530_p13 }
  0x45   :  { %1540 = shalt.err (!%p1537_p3)
}
  0x46   :  { %67 = dma.hbm_to_vmem [thread:$0]  %s1799_s4, 640, %s62_s22, [#allocation9], %s1552_s0, %s1552_s0, %s1553_s10  }
  0x47   :  { %1541 = dma.done.wait [#allocation4], 2048  }
  0x48   :  { %1542 = vsyncadd [#allocation4], 4294965248 }
  0x49   :  { %1543 = dma.done.wait [#allocation6], 3072  }
  0x4a   :  { %1544 = vsyncadd [#allocation6], 4294964224 }
  0x4b   :  { %1545 = dma.done.wait [#allocation9], 640  }
  0x4c   :  { %1546 = vsyncadd [#allocation9], 4294966656  ;;  %v1555_v1 = vmov 0.0   ;;  %v87_v2 = vld [vmem:[#allocation5 + $0x8] sm:$0xff]  ;;  %v89_v3 = vld [vmem:[#allocation5 + $0x18] sm:$0xff]  ;;  %s1556_s4 = smov 64  }
  0x4d   :  { %172 = vmatprep.mubr.f32.mxu0 %v1555_v1  ;;  %275 = vmatprep.mubr.f32.mxu1 %v1555_v1  ;;  %v86_v4 = vld [vmem:[#allocation5] sm:$0xff]  ;;  %v1664_v5 = vpack.c.bf16 %v89_v3, %v87_v2  ;;  %v88_v6 = vld [vmem:[#allocation5 + $0x10] sm:$0xff]  ;;  %v91_v7 = vld [vmem:[#allocation5 + $0x28] sm:$0xff]  ;;  %vm104_vm0 = vcmask 523264   ;;  %vm1558_vm1 = vmmov 0   ;;  %vm938_vm2 = vcmask 326656  }
  0x4e   :  { %v93_v8 = vld [vmem:[#allocation5 + $0x38] sm:$0xff]  ;;  %v1666_v9 = vpack.c.bf16 %v88_v6, %v86_v4  ;;  %v90_v11 = vld [vmem:[#allocation5 + $0x20] sm:$0xff]  ;;  %v92_v12 = vld [vmem:[#allocation5 + $0x30] sm:$0xff]  ;;  %vm1115_vm3 = vcmask 7168  }
  0x4f   :  { %v1668_v10 = vpack.c.bf16 %v93_v8, %v91_v7  ;;  %v95_v13 = vld [vmem:[#allocation5 + $0x48] sm:$0xff]  ;;  %1200 = vmatprep.subr.bf16.mxu0 %v1664_v5  ;;  %v97_v14 = vld [vmem:[#allocation5 + $0x58] sm:$0xff]  ;;  %1216 = vmatprep.subr.bf16.mxu1 %v1664_v5  ;;  %v1673_v15 = vpack.c.bf16 %v92_v12, %v90_v11  ;;  %v94_v17 = vld [vmem:[#allocation5 + $0x40] sm:$0xff] }
  0x50   :  { %1202 = vmatpush1.bf16.msra.mxu0 %v1666_v9  ;;  %1218 = vmatpush1.bf16.msra.mxu1 %v1666_v9  ;;  %v1677_v16 = vpack.c.bf16 %v97_v14, %v95_v13  ;;  %v96_v18 = vld [vmem:[#allocation5 + $0x50] sm:$0xff]  ;;  %v99_v19 = vld [vmem:[#allocation5 + $0x68] sm:$0xff]  ;;  %v101_v20 = vld [vmem:[#allocation5 + $0x78] sm:$0xff] }
  0x51   :  { %1204 = vmatprep.subr.bf16.mxu0 %v1668_v10  ;;  %1220 = vmatprep.subr.bf16.mxu1 %v1668_v10  ;;  %v1681_v21 = vpack.c.bf16 %v96_v18, %v94_v17  ;;  %v1685_v22 = vpack.c.bf16 %v101_v20, %v99_v19  ;;  %v98_v23 = vld [vmem:[#allocation5 + $0x60] sm:$0xff]  ;;  %v100_v24 = vld [vmem:[#allocation5 + $0x70] sm:$0xff]  ;;  %v103_v31 = vld [vmem:[#allocation3 + $0x8] sm:$0xff] }
  0x52   :  { %v1689_v25 = vpack.c.bf16 %v100_v24, %v98_v23  ;;  %v102_v26 = vld [vmem:[#allocation3] sm:$0xff]  ;;  %v204_v48 = vld [vmem:[#allocation3 + $0x10] sm:$0xff]  ;;  %v205_v53 = vld [vmem:[#allocation3 + $0x18] sm:$0xff] }
  0x53   :  { %v307_v8 = vld [vmem:[#allocation3 + $0x20] sm:$0xff]  ;;  %v308_v17 = vld [vmem:[#allocation3 + $0x28] sm:$0xff] }
  0x54   :  { %1206 = vmatpush1.bf16.msra.mxu0 %v1673_v15  ;;  %1222 = vmatpush1.bf16.msra.mxu1 %v1673_v15 }
  0x55   :  { %1208 = vmatprep.subr.bf16.mxu0 %v1677_v16  ;;  %1224 = vmatprep.subr.bf16.mxu1 %v1677_v16 }
  0x58   :  { %1210 = vmatpush1.bf16.msra.mxu0 %v1681_v21  ;;  %1226 = vmatpush1.bf16.msra.mxu1 %v1681_v21 }
  0x59   :  { %1212 = vmatprep.subr.bf16.mxu0 %v1685_v22  ;;  %1228 = vmatprep.subr.bf16.mxu1 %v1685_v22 }
  0x5c   :  { %1214 = vmatpush1.bf16.msra.mxu0 %v1689_v25  ;;  %1230 = vmatpush1.bf16.msra.mxu1 %v1689_v25 }
  0x5d   :  { %1232 = vmatprep.subr.bf16.mxu0 %v1664_v5  ;;  %1248 = vmatprep.subr.bf16.mxu1 %v1664_v5 }
  0x5f   :  { %173 = vmatmul.mubr.f32.vlgmr.msra.gmra.mrb[0].mxu0 %v1555_v1 }
  0x60   :  { %1234 = vmatpush1.bf16.msra.mxu0 %v1666_v9  ;;  %378 = vmatprep.mubr.f32.mxu0 %v1555_v1 }
  0x61   :  { %1236 = vmatprep.subr.bf16.mxu0 %v1668_v10 }
  0x64   :  { %1238 = vmatpush1.bf16.msra.mxu0 %v1673_v15 }
  0x65   :  { %1240 = vmatprep.subr.bf16.mxu0 %v1677_v16 }
  0x68   :  { %1242 = vmatpush1.bf16.msra.mxu0 %v1681_v21 }
  0x69   :  { %1244 = vmatprep.subr.bf16.mxu0 %v1685_v22 }
  0x6c   :  { %1246 = vmatpush1.bf16.msra.mxu0 %v1689_v25 }
  0x6d   :  { %1264 = vmatprep.subr.bf16.mxu0 %v1664_v5 }
 0x132   :  { %v174_v27 = vpop.f32.mrb[0].mxu0 }
 0x133   :  { %v179_v28 = vadd.f32 %v174_v27, %v102_v26  ;;  %v176_v29 = vpop.f32.mrb[1].mxu0 }
 0x134   :  { %v180_v32 = vadd.f32 %v176_v29, %v103_v31 }
 0x135   :  { %v1124_v30 = vmul.f32 -1.442695, %v179_v28 }
 0x136   :  { %v1125_v38 = vmul.f32 -1.442695, %v180_v32 }
 0x137   :  { %1357 = vpow2.f32 %v1124_v30 }
 0x138   :  { %1359 = vtanh.f32 %v180_v32 }
 0x141   :  { %v1358_v33 = vpop.eup %1357 }
 0x142   :  { %v184_v34 = vadd.f32 1.0, %v1358_v33  ;;  %v1360_v35 = vpop.eup %1359 }
 0x144   :  { %1361 = vrcp.f32 %v184_v34 }
 0x145   :  { %1363 = vpow2.f32 %v1125_v38 }
 0x14e   :  { %v1362_v36 = vpop.eup %1361 }
 0x14f   :  { %v195_v37 = vmul.f32 %v1362_v36, %v1360_v35  ;;  %v1364_v39 = vpop.eup %1363  ;;  %v194_v41 = vmul.f32 0.0, %v1362_v36 }
 0x150   :  { %v191_v40 = vadd.f32 1.0, %v1364_v39 }
 0x151   :  { %197 = vrot.lane.b32.xlu0 %v195_v37, %s1556_s4  ;;  %v410_v37 = vld [vmem:[#allocation3 + $0x30] sm:$0xff] }
 0x152   :  { %1365 = vrcp.f32 %v191_v40 }
 0x15c   :  { %v1366_v44 = vpop.eup %1365 }
 0x1c3   :  { %v198_v42 = vpop.permute.xlu0 %197 }
 0x1c4   :  { %v200_v43 = vadd.f32 %v198_v42, %v194_v41  ;;  %v411_v42 = vld [vmem:[#allocation3 + $0x38] sm:$0xff] }
 0x1c6   :  { %1367 = vtanh.f32 %v200_v43 }
 0x1d0   :  { %v1368_v45 = vpop.eup %1367 }
 0x1d1   :  { %v202_v46 = vmul.f32 %v1368_v45, %v1366_v44 }
 0x1d3   :  { %207 = vrot.lane.b32.xlu0 %v202_v46, %s1556_s4 }
 0x245   :  { %v208_v47 = vpop.permute.xlu0 %207 }
 0x246   :  { %1126 = vmatmul.mubr.msk.f32.vlgmr.msra.gmra.mrb[0].mxu1 %vm104_vm0, %v208_v47 }
 0x247   :  { %1250 = vmatpush1.bf16.msra.mxu1 %v1666_v9  ;;  %481 = vmatprep.mubr.f32.mxu1 %v1555_v1 }
 0x248   :  { %1252 = vmatprep.subr.bf16.mxu1 %v1668_v10 }
 0x24b   :  { %1254 = vmatpush1.bf16.msra.mxu1 %v1673_v15 }
 0x24c   :  { %1256 = vmatprep.subr.bf16.mxu1 %v1677_v16 }
 0x24f   :  { %1258 = vmatpush1.bf16.msra.mxu1 %v1681_v21 }
 0x250   :  { %1260 = vmatprep.subr.bf16.mxu1 %v1685_v22 }
 0x253   :  { %1262 = vmatpush1.bf16.msra.mxu1 %v1689_v25 }
 0x254   :  { %1280 = vmatprep.subr.bf16.mxu1 %v1664_v5 }
 0x319   :  { %v277_v49 = vpop.f32.mrb[0].mxu1 }
 0x31a   :  { %v282_v50 = vadd.f32 %v277_v49, %v204_v48  ;;  %v279_v51 = vpop.f32.mrb[1].mxu1 }
 0x31b   :  { %v283_v54 = vadd.f32 %v279_v51, %v205_v53 }
 0x31c   :  { %v1127_v52 = vmul.f32 -1.442695, %v282_v50 }
 0x31d   :  { %v1128_v60 = vmul.f32 -1.442695, %v283_v54 }
 0x31e   :  { %1369 = vpow2.f32 %v1127_v52 }
 0x31f   :  { %1371 = vtanh.f32 %v283_v54 }
 0x328   :  { %v1370_v55 = vpop.eup %1369 }
 0x329   :  { %v287_v56 = vadd.f32 1.0, %v1370_v55  ;;  %v1372_v57 = vpop.eup %1371 }
 0x32b   :  { %1373 = vrcp.f32 %v287_v56 }
 0x32c   :  { %1375 = vpow2.f32 %v1128_v60 }
 0x335   :  { %v1374_v58 = vpop.eup %1373 }
 0x336   :  { %v298_v59 = vmul.f32 %v1374_v58, %v1372_v57  ;;  %v1376_v61 = vpop.eup %1375  ;;  %v297_v63 = vmul.f32 %v1374_v58, %v200_v43  ;;  %v513_v58 = vld [vmem:[#allocation3 + $0x40] sm:$0xff] }
 0x337   :  { %v294_v62 = vadd.f32 1.0, %v1376_v61 }
 0x338   :  { %300 = vrot.lane.b32.xlu1 %v298_v59, %s1556_s4 }
 0x339   :  { %1377 = vrcp.f32 %v294_v62 }
 0x343   :  { %v1378_v3 = vpop.eup %1377 }
 0x3aa   :  { %v301_v0 = vpop.permute.xlu1 %300 }
 0x3ab   :  { %v303_v2 = vadd.f32 %v301_v0, %v297_v63  ;;  %v514_v63 = vld [vmem:[#allocation3 + $0x48] sm:$0xff] }
 0x3ad   :  { %1379 = vtanh.f32 %v303_v2 }
 0x3b7   :  { %v1380_v4 = vpop.eup %1379 }
 0x3b8   :  { %v305_v6 = vmul.f32 %v1380_v4, %v1378_v3 }
 0x3ba   :  { %310 = vrot.lane.b32.xlu1 %v305_v6, %s1556_s4 }
 0x42c   :  { %v311_v7 = vpop.permute.xlu1 %310 }
 0x42d   :  { %1129 = vmatmul.mubr.msk.f32.vlgmr.msra.gmra.mrb[2].mxu0 %vm104_vm0, %v311_v7 }
 0x42e   :  { %1266 = vmatpush1.bf16.msra.mxu0 %v1666_v9  ;;  %584 = vmatprep.mubr.f32.mxu0 %v1555_v1 }
 0x42f   :  { %1268 = vmatprep.subr.bf16.mxu0 %v1668_v10 }
 0x432   :  { %1270 = vmatpush1.bf16.msra.mxu0 %v1673_v15 }
 0x433   :  { %1272 = vmatprep.subr.bf16.mxu0 %v1677_v16 }
 0x436   :  { %1274 = vmatpush1.bf16.msra.mxu0 %v1681_v21 }
 0x437   :  { %1276 = vmatprep.subr.bf16.mxu0 %v1685_v22 }
 0x43a   :  { %1278 = vmatpush1.bf16.msra.mxu0 %v1689_v25 }
 0x43b   :  { %1296 = vmatprep.subr.bf16.mxu0 %v1664_v5 }
 0x500   :  { %v380_v11 = vpop.f32.mrb[2].mxu0 }
 0x501   :  { %v385_v12 = vadd.f32 %v380_v11, %v307_v8  ;;  %v382_v13 = vpop.f32.mrb[3].mxu0 }
 0x502   :  { %v386_v18 = vadd.f32 %v382_v13, %v308_v17 }
 0x503   :  { %v1130_v14 = vmul.f32 -1.442695, %v385_v12 }
 0x504   :  { %v1131_v27 = vmul.f32 -1.442695, %v386_v18 }
 0x505   :  { %1381 = vpow2.f32 %v1130_v14 }
 0x506   :  { %1383 = vtanh.f32 %v386_v18 }
 0x50f   :  { %v1382_v19 = vpop.eup %1381 }
 0x510   :  { %v390_v20 = vadd.f32 1.0, %v1382_v19  ;;  %v1384_v23 = vpop.eup %1383 }
 0x512   :  { %1385 = vrcp.f32 %v390_v20 }
 0x513   :  { %1387 = vpow2.f32 %v1131_v27 }
 0x51c   :  { %v1386_v24 = vpop.eup %1385 }
 0x51d   :  { %v401_v26 = vmul.f32 %v1386_v24, %v1384_v23  ;;  %v1388_v28 = vpop.eup %1387  ;;  %v400_v30 = vmul.f32 %v1386_v24, %v303_v2  ;;  %v616_v24 = vld [vmem:[#allocation3 + $0x50] sm:$0xff] }
 0x51e   :  { %v397_v29 = vadd.f32 1.0, %v1388_v28 }
 0x51f   :  { %403 = vrot.lane.b32.xlu0 %v401_v26, %s1556_s4 }
 0x520   :  { %1389 = vrcp.f32 %v397_v29 }
 0x52a   :  { %v1390_v33 = vpop.eup %1389 }
 0x591   :  { %v404_v31 = vpop.permute.xlu0 %403 }
 0x592   :  { %v406_v32 = vadd.f32 %v404_v31, %v400_v30 }
 0x594   :  { %1391 = vtanh.f32 %v406_v32 }
 0x59e   :  { %v1392_v34 = vpop.eup %1391 }
 0x59f   :  { %v408_v35 = vmul.f32 %v1392_v34, %v1390_v33 }
 0x5a1   :  { %413 = vrot.lane.b32.xlu1 %v408_v35, %s1556_s4 }
 0x613   :  { %v414_v36 = vpop.permute.xlu1 %413 }
 0x614   :  { %1132 = vmatmul.mubr.msk.f32.vlgmr.msra.gmra.mrb[2].mxu1 %vm104_vm0, %v414_v36 }
 0x615   :  { %1282 = vmatpush1.bf16.msra.mxu1 %v1666_v9  ;;  %687 = vmatprep.mubr.f32.mxu1 %v1555_v1 }
 0x616   :  { %1284 = vmatprep.subr.bf16.mxu1 %v1668_v10 }
 0x619   :  { %1286 = vmatpush1.bf16.msra.mxu1 %v1673_v15 }
 0x61a   :  { %1288 = vmatprep.subr.bf16.mxu1 %v1677_v16 }
 0x61d   :  { %1290 = vmatpush1.bf16.msra.mxu1 %v1681_v21 }
 0x61e   :  { %1292 = vmatprep.subr.bf16.mxu1 %v1685_v22 }
 0x621   :  { %1294 = vmatpush1.bf16.msra.mxu1 %v1689_v25 }
 0x622   :  { %1312 = vmatprep.subr.bf16.mxu1 %v1664_v5 }
 0x6e7   :  { %v483_v38 = vpop.f32.mrb[2].mxu1 }
 0x6e8   :  { %v488_v39 = vadd.f32 %v483_v38, %v410_v37  ;;  %v485_v40 = vpop.f32.mrb[3].mxu1 }
 0x6e9   :  { %v489_v43 = vadd.f32 %v485_v40, %v411_v42  ;;  %v719_v40 = vld [vmem:[#allocation3 + $0x60] sm:$0xff] }
 0x6ea   :  { %v1133_v41 = vmul.f32 -1.442695, %v488_v39 }
 0x6eb   :  { %v1134_v49 = vmul.f32 -1.442695, %v489_v43 }
 0x6ec   :  { %1393 = vpow2.f32 %v1133_v41 }
 0x6ed   :  { %1395 = vtanh.f32 %v489_v43 }
 0x6f6   :  { %v1394_v44 = vpop.eup %1393 }
 0x6f7   :  { %v493_v45 = vadd.f32 1.0, %v1394_v44  ;;  %v1396_v46 = vpop.eup %1395 }
 0x6f9   :  { %1397 = vrcp.f32 %v493_v45  ;;  %v720_v45 = vld [vmem:[#allocation3 + $0x68] sm:$0xff] }
 0x6fa   :  { %1399 = vpow2.f32 %v1134_v49 }
 0x703   :  { %v1398_v47 = vpop.eup %1397 }
 0x704   :  { %v504_v48 = vmul.f32 %v1398_v47, %v1396_v46  ;;  %v1400_v5 = vpop.eup %1399  ;;  %v503_v51 = vmul.f32 %v1398_v47, %v406_v32 }
 0x705   :  { %v500_v50 = vadd.f32 1.0, %v1400_v5 }
 0x706   :  { %506 = vrot.lane.b32.xlu0 %v504_v48, %s1556_s4 }
 0x707   :  { %1401 = vrcp.f32 %v500_v50 }
 0x711   :  { %v1402_v54 = vpop.eup %1401 }
 0x778   :  { %v507_v52 = vpop.permute.xlu0 %506 }
 0x779   :  { %v509_v53 = vadd.f32 %v507_v52, %v503_v51 }
 0x77b   :  { %1403 = vtanh.f32 %v509_v53 }
 0x785   :  { %v1404_v55 = vpop.eup %1403 }
 0x786   :  { %v511_v56 = vmul.f32 %v1404_v55, %v1402_v54 }
 0x788   :  { %516 = vrot.lane.b32.xlu1 %v511_v56, %s1556_s4 }
 0x7fa   :  { %v517_v57 = vpop.permute.xlu1 %516 }
 0x7fb   :  { %1135 = vmatmul.mubr.msk.f32.vlgmr.msra.gmra.mrb[4].mxu0 %vm104_vm0, %v517_v57 }
 0x7fc   :  { %1298 = vmatpush1.bf16.msra.mxu0 %v1666_v9  ;;  %790 = vmatprep.mubr.f32.mxu0 %v1555_v1 }
 0x7fd   :  { %1300 = vmatprep.subr.bf16.mxu0 %v1668_v10 }
 0x800   :  { %1302 = vmatpush1.bf16.msra.mxu0 %v1673_v15 }
 0x801   :  { %1304 = vmatprep.subr.bf16.mxu0 %v1677_v16 }
 0x804   :  { %1306 = vmatpush1.bf16.msra.mxu0 %v1681_v21 }
 0x805   :  { %1308 = vmatprep.subr.bf16.mxu0 %v1685_v22 }
 0x808   :  { %1310 = vmatpush1.bf16.msra.mxu0 %v1689_v25 }
 0x8ce   :  { %v586_v59 = vpop.f32.mrb[4].mxu0 }
 0x8cf   :  { %v591_v60 = vadd.f32 %v586_v59, %v513_v58  ;;  %v588_v61 = vpop.f32.mrb[5].mxu0 }
 0x8d0   :  { %v592_v0 = vadd.f32 %v588_v61, %v514_v63  ;;  %v822_v61 = vld [vmem:[#allocation3 + $0x70] sm:$0xff] }
 0x8d1   :  { %v1136_v62 = vmul.f32 -1.442695, %v591_v60 }
 0x8d2   :  { %v1137_v8 = vmul.f32 -1.442695, %v592_v0 }
 0x8d3   :  { %1405 = vpow2.f32 %v1136_v62 }
 0x8d4   :  { %1407 = vtanh.f32 %v592_v0 }
 0x8dd   :  { %v1406_v2 = vpop.eup %1405 }
 0x8de   :  { %v596_v3 = vadd.f32 1.0, %v1406_v2  ;;  %v1408_v4 = vpop.eup %1407 }
 0x8e0   :  { %1409 = vrcp.f32 %v596_v3  ;;  %v823_v3 = vld [vmem:[#allocation3 + $0x78] sm:$0xff] }
 0x8e1   :  { %1411 = vpow2.f32 %v1137_v8 }
 0x8ea   :  { %v1410_v6 = vpop.eup %1409 }
 0x8eb   :  { %v607_v7 = vmul.f32 %v1410_v6, %v1408_v4  ;;  %v1412_v11 = vpop.eup %1411  ;;  %v606_v13 = vmul.f32 %v1410_v6, %v509_v53 }
 0x8ec   :  { %v603_v12 = vadd.f32 1.0, %v1412_v11 }
 0x8ed   :  { %609 = vrot.lane.b32.xlu0 %v607_v7, %s1556_s4 }
 0x8ee   :  { %1413 = vrcp.f32 %v603_v12 }
 0x8f8   :  { %v1414_v18 = vpop.eup %1413 }
 0x95f   :  { %v610_v14 = vpop.permute.xlu0 %609 }
 0x960   :  { %v612_v17 = vadd.f32 %v610_v14, %v606_v13  ;;  %v924_v13 = vld [vmem:[#allocation7] sm:$0xff]  ;;  %v925_v14 = vld [vmem:[#allocation7 + $0x8] sm:$0xff] }
 0x962   :  { %1415 = vtanh.f32 %v612_v17 }
 0x96c   :  { %v1416_v19 = vpop.eup %1415 }
 0x96d   :  { %v614_v20 = vmul.f32 %v1416_v19, %v1414_v18  ;;  %v1557_v18 = vmov 0.0|0.0   ;;  %v1334_v19 = vpack.c.bf16 %v925_v14, %v924_v13 }
 0x96e   :  { %1327 = vmatprep.subr.bf16.mxu0 %v1557_v18 }
 0x96f   :  { %619 = vrot.lane.b32.xlu1 %v614_v20, %s1556_s4  ;;  %v927_v20 = vld [vmem:[#allocation7 + $0x18] sm:$0xff] }
 0x9e1   :  { %v620_v23 = vpop.permute.xlu1 %619 }
 0x9e2   :  { %1138 = vmatmul.mubr.msk.f32.vlgmr.msra.gmra.mrb[4].mxu1 %vm104_vm0, %v620_v23  ;;  %v933_v23 = vld [vmem:[#allocation8] sm:$0xff] }
 0x9e3   :  { %1314 = vmatpush1.bf16.msra.mxu1 %v1666_v9  ;;  %893 = vmatprep.mubr.f32.mxu1 %v1555_v1  ;;  %v617_v9 = vld [vmem:[#allocation3 + $0x58] sm:$0xff] }
 0x9e4   :  { %1316 = vmatprep.subr.bf16.mxu1 %v1668_v10 }
 0x9e7   :  { %1318 = vmatpush1.bf16.msra.mxu1 %v1673_v15 }
 0x9e8   :  { %1320 = vmatprep.subr.bf16.mxu1 %v1677_v16 }
 0x9eb   :  { %1322 = vmatpush1.bf16.msra.mxu1 %v1681_v21 }
 0x9ec   :  { %1324 = vmatprep.subr.bf16.mxu1 %v1685_v22 }
 0x9ef   :  { %1326 = vmatpush1.bf16.msra.mxu1 %v1689_v25 }
 0x9f0   :  { %1333 = vmatprep.subr.bf16.mxu1 %v1557_v18 }
 0xab5   :  { %v689_v26 = vpop.f32.mrb[4].mxu1 }
 0xab6   :  { %v694_v27 = vadd.f32 %v689_v26, %v616_v24  ;;  %v691_v28 = vpop.f32.mrb[5].mxu1  ;;  %v934_v24 = vld [vmem:[#allocation8 + $0x8] sm:$0xff] }
 0xab7   :  { %v695_v30 = vadd.f32 %v691_v28, %v617_v9  ;;  %v1328_v26 = vpack.c.bf16 %v934_v24, %v933_v23  ;;  %v928_v9 = vld [vmem:[#allocation7 + $0x20] sm:$0xff] }
 0xab8   :  { %v1139_v29 = vmul.f32 -1.442695, %v694_v27  ;;  %v935_v27 = vld [vmem:[#allocation8 + $0x10] sm:$0xff] }
 0xab9   :  { %v1140_v21 = vmul.f32 -1.442695, %v695_v30 }
 0xaba   :  { %1417 = vpow2.f32 %v1139_v29  ;;  %v936_v29 = vld [vmem:[#allocation8 + $0x18] sm:$0xff] }
 0xabb   :  { %1419 = vtanh.f32 %v695_v30  ;;  %v929_v30 = vld [vmem:[#allocation7 + $0x28] sm:$0xff] }
 0xac4   :  { %v1418_v31 = vpop.eup %1417 }
 0xac5   :  { %v699_v10 = vadd.f32 1.0, %v1418_v31  ;;  %v1420_v15 = vpop.eup %1419  ;;  %v1331_v31 = vpack.c.bf16 %v936_v29, %v935_v27 }
 0xac7   :  { %1421 = vrcp.f32 %v699_v10  ;;  %v1340_v10 = vpack.c.bf16 %v929_v30, %v928_v9 }
 0xac8   :  { %1423 = vpow2.f32 %v1140_v21  ;;  %v932_v21 = vld [vmem:[%s1797_s2] sm:$0xff] }
 0xad1   :  { %v1422_v16 = vpop.eup %1421 }
 0xad2   :  { %v710_v32 = vmul.f32 %v1422_v16, %v1420_v15  ;;  %v1424_v22 = vpop.eup %1423  ;;  %v709_v33 = vmul.f32 %v1422_v16, %v612_v17  ;;  %v926_v17 = vld [vmem:[#allocation7 + $0x10] sm:$0xff]  ;;  %v931_v16 = vld [vmem:[#allocation7 + $0x38] sm:$0xff] }
 0xad3   :  { %v706_v25 = vadd.f32 1.0, %v1424_v22  ;;  %v1337_v28 = vpack.c.bf16 %v927_v20, %v926_v17  ;;  %v930_v15 = vld [vmem:[#allocation7 + $0x30] sm:$0xff] }
 0xad4   :  { %712 = vrot.lane.b32.xlu0 %v710_v32, %s1556_s4  ;;  %v937_v32 = vld [vmem:[#allocation8 + $0x20] sm:$0xff]  ;;  %v1343_v22 = vpack.c.bf16 %v931_v16, %v930_v15 }
 0xad5   :  { %1425 = vrcp.f32 %v706_v25 }
 0xadf   :  { %v1426_v36 = vpop.eup %1425 }
 0xb46   :  { %v713_v34 = vpop.permute.xlu0 %712 }
 0xb47   :  { %v715_v35 = vadd.f32 %v713_v34, %v709_v33 }
 0xb49   :  { %1427 = vtanh.f32 %v715_v35 }
 0xb53   :  { %v1428_v37 = vpop.eup %1427 }
 0xb54   :  { %v717_v38 = vmul.f32 %v1428_v37, %v1426_v36 }
 0xb56   :  { %722 = vrot.lane.b32.xlu1 %v717_v38, %s1556_s4 }
 0xbc8   :  { %v723_v39 = vpop.permute.xlu1 %722 }
 0xbc9   :  { %1141 = vmatmul.mubr.msk.f32.vlgmr.msra.gmra.mrb[6].mxu0 %vm104_vm0, %v723_v39 }
 0xbca   :  { %1177 = vmatprep.mubr.msk.f32.mxu0 %vm1558_vm1, %v1555_v1  ;;  %1329 = vmatpush3.bf16.msra.mxu0 %v1328_v26 }
 0xbcb   :  { %1330 = vmatprep.subr.bf16.mxu0 %v1557_v18 }
 0xbce   :  { %1332 = vmatpush3.bf16.msra.mxu0 %v1331_v31 }
 0xbcf   :  { %1175 = vmatprep.subr.mxu0 %v1555_v1 }
 0xbd2   :  { %1176 = vmatpush3.msra.mxu0 %v937_v32 }
 0xbd3   :  { %1178 = vmatmul.mubr.msk.f32.vlgmr.msra.gmra.mrb[8].mxu0 %vm938_vm2, %v932_v21 }
 0xc9c   :  { %v792_v41 = vpop.f32.mrb[6].mxu0 }
 0xc9d   :  { %v797_v42 = vadd.f32 %v792_v41, %v719_v40  ;;  %v794_v43 = vpop.f32.mrb[7].mxu0 }
 0xc9e   :  { %v798_v46 = vadd.f32 %v794_v43, %v720_v45 }
 0xc9f   :  { %v1142_v44 = vmul.f32 -1.442695, %v797_v42 }
 0xca0   :  { %v1143_v51 = vmul.f32 -1.442695, %v798_v46 }
 0xca1   :  { %1429 = vpow2.f32 %v1142_v44  ;;  %v1149_v44 = vld [vmem:[%s1800_s5] ss:$0 sm:$0xff] }
 0xca2   :  { %1431 = vtanh.f32 %v798_v46 }
 0xca6   :  { %v1008_v40 = vpop.f32.mrb[8].mxu0 }
 0xca7   :  { %v1179_v41 = vpop.f32.mrb[9].mxu0 }
 0xcab   :  { %v1430_v47 = vpop.eup %1429 }
 0xcac   :  { %v802_v48 = vadd.f32 1.0, %v1430_v47  ;;  %v1432_v49 = vpop.eup %1431 }
 0xcae   :  { %1433 = vrcp.f32 %v802_v48  ;;  %v1150_v48 = vld [vmem:[%s1801_s6] ss:$0 sm:$0xff] }
 0xcaf   :  { %1435 = vpow2.f32 %v1143_v51  ;;  %v1151_v51 = vld [vmem:[#allocation2] ss:$0 sm:$0xff] }
 0xcb8   :  { %v1434_v5 = vpop.eup %1433 }
 0xcb9   :  { %v813_v50 = vmul.f32 %v1434_v5, %v1432_v49  ;;  %v1436_v52 = vpop.eup %1435  ;;  %v812_v54 = vmul.f32 %v1434_v5, %v715_v35 }
 0xcba   :  { %v809_v53 = vadd.f32 1.0, %v1436_v52 }
 0xcbb   :  { %815 = vrot.lane.b32.xlu0 %v813_v50, %s1556_s4 }
 0xcbc   :  { %1437 = vrcp.f32 %v809_v53 }
 0xcc6   :  { %v1438_v57 = vpop.eup %1437 }
 0xd2d   :  { %v816_v55 = vpop.permute.xlu0 %815 }
 0xd2e   :  { %v1770_v56 = vadd.f32 %v816_v55, %v812_v54 }
 0xd30   :  { %1439 = vtanh.f32 %v1770_v56 }
 0xd3a   :  { %v1440_v58 = vpop.eup %1439 }
 0xd3b   :  { %v820_v59 = vmul.f32 %v1440_v58, %v1438_v57 }
 0xd3d   :  { %825 = vrot.lane.b32.xlu1 %v820_v59, %s1556_s4 }
 0xdaf   :  { %v826_v60 = vpop.permute.xlu1 %825 }
 0xdb0   :  { %1144 = vmatmul.mubr.msk.f32.vlgmr.msra.gmra.mrb[6].mxu1 %vm104_vm0, %v826_v60 }
 0xdb1   :  { %1196 = vmatprep.mubr.msk.f32.mxu1 %vm1558_vm1, %v1555_v1  ;;  %1335 = vmatpush3.bf16.msra.mxu1 %v1334_v19 }
 0xdb2   :  { %1336 = vmatprep.subr.bf16.mxu1 %v1557_v18 }
 0xdb5   :  { %1338 = vmatpush3.bf16.msra.mxu1 %v1337_v28 }
 0xdb6   :  { %1339 = vmatprep.subr.bf16.mxu1 %v1557_v18 }
 0xdb9   :  { %1341 = vmatpush3.bf16.msra.mxu1 %v1340_v10 }
 0xdba   :  { %1342 = vmatprep.subr.bf16.mxu1 %v1557_v18 }
 0xdbd   :  { %1344 = vmatpush3.bf16.msra.mxu1 %v1343_v22 }
 0xe83   :  { %v895_v62 = vpop.f32.mrb[6].mxu1 }
 0xe84   :  { %v900_v63 = vadd.f32 %v895_v62, %v822_v61  ;;  %v897_v0 = vpop.f32.mrb[7].mxu1 }
 0xe85   :  { %v901_v4 = vadd.f32 %v897_v0, %v823_v3 }
 0xe86   :  { %v1145_v2 = vmul.f32 -1.442695, %v900_v63 }
 0xe87   :  { %v1146_v25 = vmul.f32 -1.442695, %v901_v4 }
 0xe88   :  { %1441 = vpow2.f32 %v1145_v2 }
 0xe89   :  { %1443 = vtanh.f32 %v901_v4 }
 0xe92   :  { %v1442_v6 = vpop.eup %1441 }
 0xe93   :  { %v905_v7 = vadd.f32 1.0, %v1442_v6  ;;  %v1444_v8 = vpop.eup %1443 }
 0xe95   :  { %1445 = vrcp.f32 %v905_v7 }
 0xe96   :  { %1447 = vpow2.f32 %v1146_v25 }
 0xe9f   :  { %v1446_v11 = vpop.eup %1445 }
 0xea0   :  { %v916_v12 = vmul.f32 %v1446_v11, %v1444_v8  ;;  %v1448_v33 = vpop.eup %1447  ;;  %v915_v35 = vmul.f32 %v1446_v11, %v1770_v56 }
 0xea1   :  { %v912_v34 = vadd.f32 1.0, %v1448_v33 }
 0xea2   :  { %918 = vrot.lane.b32.xlu0 %v916_v12, %s1556_s4 }
 0xea3   :  { %1449 = vrcp.f32 %v912_v34 }
 0xead   :  { %v1450_v37 = vpop.eup %1449 }
 0xf14   :  { %v919_v36 = vpop.permute.xlu0 %918 }
 0xf15   :  { %v921_v1 = vadd.f32 %v919_v36, %v915_v35 }
 0xf17   :  { %1451 = vtanh.f32 %v921_v1 }
 0xf21   :  { %v1452_v38 = vpop.eup %1451 }
 0xf22   :  { %v923_v39 = vmul.f32 %v1452_v38, %v1450_v37 }
 0xf24   :  { %1013 = vrot.lane.b32.xlu1 %v923_v39, %s1556_s4 }
 0xf96   :  { %v1014_v42 = vpop.permute.xlu1 %1013 }
 0xf97   :  { %1197 = vmatmul.mubr.msk.f32.vlgmr.msra.gmra.mrb[8].mxu1 %vm104_vm0, %v1014_v42 }
0x106a   :  { %v1083_v43 = vpop.f32.mrb[8].mxu1 }
0x106b   :  { %v1084_v45 = vadd.f32 %v1083_v43, %v1008_v40  ;;  %v1198_v46 = vpop.f32.mrb[9].mxu1 }
0x106d   :  { %v1094_v47 = vadd.f32 %v1149_v44, %v1084_v45 }
0x106f   :  { %v1095_v49 = vmax.f32 %v1094_v47, 0.0 }
0x1071   :  { %v1103_v5 = vmul.f32 %v1150_v48, %v1095_v49 }
0x1073   :  { %v1104_v50 = vsel %vm104_vm0, %v1103_v5, 0.0 }
0x1074   :  { %1105 = vadd.xlane.f32.xlu0 %v1104_v50 }
0x1101   :  { %v1106_v52 = vpop.xlane.xlu0 %1105 }
0x1102   :  { %v1114_v53 = vadd.f32 %v1151_v51, %v1106_v52 }
0x1104   :  { %1116 = vst.msk [vmem:[%s1803_s8] sm:$0xff] %vm1115_vm3, %v1114_v53 }
0x1105   :  { %1121 = vsyncpa [#allocation4], 1 }
0x1106   :  { %1122 = vsyncpa [#allocation6], 1 }
0x1107   :  { %1123 = vsyncpa [#allocation9], 1 }

</bundles_post_ra>
